<compile_context>
chip_gen: v7x
topology: tpu7x:2x2x1
jax: 0.10.0
libtpu: 0.0.40
codegen_flags: <defaults>
</compile_context>

<pallas_src>
import functools

import numpy as np
import jax
import jax.numpy as jnp
from jax.experimental import pallas as pl
from jax.experimental.pallas import tpu as pltpu


def _ceil_div(a, b):
    return -(-a // b)


def _round_up(a, m):
    return _ceil_div(a, m) * m


def _vfe_kernel(convb_ref, ct_ref, bw_ref, bb_ref, x_ref, o_ref):
    """conv-as-matmul + ReLU + bridge Linear for one lane tile of slices.

    convb_ref: (1,)      SMEM  conv bias (f32 scalar)
    ct_ref:    (HW, HW)  VMEM  conv operator, bf16, [out_feature, in_feature]
    bw_ref:    (E, HW)   VMEM  bridge weight, bf16 (torch layout)
    bb_ref:    (E, 1)    VMEM  bridge bias, f32
    x_ref:     (HW, tn)  VMEM  flattened slices, bf16, slice index on lanes
    o_ref:     (E, tn)   VMEM  transposed output embeddings, f32
    """
    # Conv (zero padding folded into the operator): bf16 x bf16 -> f32 acc.
    feat = jnp.dot(ct_ref[...], x_ref[...], preferred_element_type=jnp.float32)
    feat = jnp.maximum(feat + convb_ref[0], 0.0)
    # Bridge Linear, transposed: (E, HW) @ (HW, tn) -> (E, tn), f32 acc.
    out = jnp.dot(bw_ref[...], feat.astype(jnp.bfloat16),
                  preferred_element_type=jnp.float32)
    o_ref[...] = (out + bb_ref[...]).astype(o_ref.dtype)


def _conv_as_matmul(conv_w, H, W):
    """Dense (H*W, H*W) operator CT with CT[out, in] so that
    conv_out^T = CT @ x^T reproduces a stride-1 'same' zero-padded conv."""
    kh, kw = conv_w.shape
    ph, pw = (kh - 1) // 2, (kw - 1) // 2
    h = np.arange(H)
    w = np.arange(W)
    dY = h[None, :] - h[:, None] + ph           # [out_h, in_h]
    dX = w[None, :] - w[:, None] + pw           # [out_w, in_w]
    vY = (dY >= 0) & (dY < kh)
    vX = (dX >= 0) & (dX < kw)
    dYc = np.clip(dY, 0, kh - 1)
    dXc = np.clip(dX, 0, kw - 1)
    ct = conv_w[dYc[:, None, :, None], dXc[None, :, None, :]]   # (Ho, Wo, Hi, Wi)
    mask = vY[:, None, :, None] & vX[None, :, None, :]
    ct = jnp.where(jnp.asarray(mask), ct, 0.0)
    return ct.reshape(H * W, H * W).astype(jnp.float32)


def visual_feature_extractor(images, conv_w, conv_b, bridge_w, bridge_b, *,
                             slice_width, slice_height, embed_dim, stride,
                             lane_tile=4096, min_grid_steps=4):
    """JAX/Pallas equivalent of VisualFeatureExtractor.forward (NCHW input)."""
    B, C, H, Wt = images.shape
    assert C == 1, "Conv2d(1, 1, ...) requires a single input channel"
    assert H == slice_height
    assert stride == slice_width and Wt % stride == 0

    sw = slice_width
    src_len = Wt // stride
    N = B * src_len
    HW = H * sw
    E = embed_dim

    # ---- layout flip (one fused XLA pass, bf16): N -> lanes, H*W -> sublanes.
    x16 = images.astype(jnp.bfloat16).reshape(B, H, src_len, sw)     # [b,h,s,w]
    xT = x16.transpose(1, 3, 0, 2).reshape(HW, N)                    # [(h*sw+w), (b*src_len+s)]

    # Lane tile: multiple of 128, large enough to amortize per-step pipeline
    # overhead, but keep >= min_grid_steps grid steps (pipelining + megacore)
    # and bounded VMEM on every TPU generation.
    tn = max(128, min(_round_up(lane_tile, 128),
                      _round_up(_ceil_div(N, min_grid_steps), 128)))
    grid = (_ceil_div(N, tn),)

    ct = _conv_as_matmul(conv_w.astype(jnp.float32), H, sw).astype(jnp.bfloat16)
    bw = bridge_w.astype(jnp.bfloat16)                               # (E, HW)
    bb = bridge_b.reshape(E, 1).astype(jnp.float32)
    cb = conv_b.reshape(1).astype(jnp.float32)

    outT = pl.pallas_call(
        _vfe_kernel,
        out_shape=jax.ShapeDtypeStruct((E, N), jnp.float32),
        grid_spec=pltpu.PrefetchScalarGridSpec(
            num_scalar_prefetch=0,
            grid=grid,
            in_specs=[
                pl.BlockSpec(memory_space=pltpu.MemorySpace.SMEM),   # conv bias
                pl.BlockSpec((HW, HW), lambda i: (0, 0)),            # conv operator (resident)
                pl.BlockSpec((E, HW), lambda i: (0, 0)),             # bridge weight (resident)
                pl.BlockSpec((E, 1), lambda i: (0, 0)),              # bridge bias (resident)
                # NOTE: add pipeline_mode=pl.Buffered(3) here only if an xprof
                # trace still shows exposed input DMA at the chosen tile size.
                pl.BlockSpec((HW, tn), lambda i: (0, i)),            # slices (pipelined)
            ],
            out_specs=pl.BlockSpec((E, tn), lambda i: (0, i)),
        ),
        compiler_params=pltpu.CompilerParams(
            dimension_semantics=("parallel",),
            vmem_limit_bytes=32 * 1024 * 1024),
    )(cb, ct, bw, bb, xT)

    # Cheap wrapper-side layout restore: (E, N) -> (B, src_len, E).
    return outT.T.reshape(B, src_len, E)


def _reference(images, conv_w, conv_b, bridge_w, bridge_b, *,
               slice_width, slice_height, embed_dim, stride):
    """Pure-JAX reference mirroring the PyTorch forward pass.

    Inputs/weights are rounded to bf16 exactly as the kernel streams them
    (declared precision policy); all accumulation is f32 (HIGHEST matmul), so
    the comparison only tolerates summation-order differences.
    """
    B, C, H, Wt = images.shape
    src_len = Wt // stride
    kh, kw = conv_w.shape
    ph, pw = (kh - 1) // 2, (kw - 1) // 2
    bf = lambda a: a.astype(jnp.bfloat16).astype(jnp.float32)

    x = bf(images).reshape(B, H, src_len, stride)
    x = x.transpose(0, 2, 1, 3).reshape(B * src_len, H, stride)
    cw = bf(conv_w)
    xp = jnp.pad(x, ((0, 0), (ph, ph), (pw, pw)))
    acc = jnp.zeros_like(x)
    for dy in range(kh):
        for dx in range(kw):
            acc = acc + cw[dy, dx] * xp[:, dy:dy + H, dx:dx + stride]
    acc = jnp.maximum(acc + conv_b[0], 0.0)
    feat = bf(acc).reshape(B * src_len, H * stride)
    out = jnp.dot(feat, bf(bridge_w).T,
                  precision=jax.lax.Precision.HIGHEST) + bridge_b
    return out.reshape(B, src_len, embed_dim)


if __name__ == "__main__":
    # Small, module-consistent shapes; picked so the tile heuristic lands on
    # tn=512 with a 4-step grid (pipelining / megacore sharding exercised).
    batch = 2
    slice_height = 8          # image height
    slice_width = 8           # == stride
    stride = 8
    embed_dim = 32
    width = 8192              # -> src_len = 1024, N = 2048, tn = 512, grid = 4

    key = jax.random.PRNGKey(0)
    k1, k2, k3, k4, k5 = jax.random.split(key, 5)
    # torch.nn.init.uniform_(param, -0.08, 0.08) for every parameter.
    conv_w = jax.random.uniform(k1, (3, 3), jnp.float32, -0.08, 0.08)
    conv_b = jax.random.uniform(k2, (1,), jnp.float32, -0.08, 0.08)
    bridge_w = jax.random.uniform(
        k3, (embed_dim, slice_width * slice_height), jnp.float32, -0.08, 0.08)
    bridge_b = jax.random.uniform(k4, (embed_dim,), jnp.float32, -0.08, 0.08)

    images = jax.random.uniform(
        k5, (batch, 1, slice_height, width), jnp.float32)

    fn = jax.jit(functools.partial(
        visual_feature_extractor,
        slice_width=slice_width, slice_height=slice_height,
        embed_dim=embed_dim, stride=stride))
    out = jax.block_until_ready(fn(images, conv_w, conv_b, bridge_w, bridge_b))

    ref = _reference(
        images, conv_w, conv_b, bridge_w, bridge_b,
        slice_width=slice_width, slice_height=slice_height,
        embed_dim=embed_dim, stride=stride)

    assert out.shape == (batch, width // stride, embed_dim)
    np.testing.assert_allclose(np.asarray(out), np.asarray(ref),
                               rtol=1e-3, atol=1e-4)
    print("KERNEL_OK")
</pallas_src>

<mosaic_0001>
module attributes {stable_mosaic.version = 11 : i64} {
  func.func @_vfe_kernel(%arg0: i32, %arg1: memref<1xf32, #tpu.memory_space<smem>>, %arg2: memref<64x64xbf16, #tpu.memory_space<vmem>>, %arg3: memref<32x64xbf16, #tpu.memory_space<vmem>>, %arg4: memref<32x1xf32, #tpu.memory_space<vmem>>, %arg5: memref<64x512xbf16, #tpu.memory_space<vmem>>, %arg6: memref<32x512xf32, #tpu.memory_space<vmem>>) attributes {dimension_semantics = [#tpu.dimension_semantics<parallel>], iteration_bounds = array<i64: 4>, scalar_prefetch = 0 : i64, scratch_operands = 0 : i64, tpu.core_type = #tpu.core_type<tc>, window_params = [{transform_indices = @transform_0, window_bounds = array<i64: 1>}, {pipeline_mode = #tpu.pipeline_mode<synchronous>, transform_indices = @transform_1, window_bounds = array<i64: 64, 64>}, {pipeline_mode = #tpu.pipeline_mode<synchronous>, transform_indices = @transform_2, window_bounds = array<i64: 32, 64>}, {pipeline_mode = #tpu.pipeline_mode<synchronous>, transform_indices = @transform_3, window_bounds = array<i64: 32, 1>}, {transform_indices = @transform_4, window_bounds = array<i64: 64, 512>}, {transform_indices = @transform_5, window_bounds = array<i64: 32, 512>}]} {
    %c0 = arith.constant 0 : index
    %c0_0 = arith.constant 0 : index
    %0 = vector.load %arg2[%c0, %c0_0] : memref<64x64xbf16, #tpu.memory_space<vmem>>, vector<64x64xbf16>
    %c0_1 = arith.constant 0 : index
    %c0_2 = arith.constant 0 : index
    %1 = vector.load %arg5[%c0_1, %c0_2] : memref<64x512xbf16, #tpu.memory_space<vmem>>, vector<64x512xbf16>
    %cst = arith.constant dense<0.000000e+00> : vector<64x512xf32>
    %2 = tpu.matmul %0, %1, %cst {dimension_numbers = #tpu.dot_dimension_numbers<[1], [0], [0], [1], [0, 0, 1, 1], [], []>} : vector<64x64xbf16>, vector<64x512xbf16>, vector<64x512xf32> -> vector<64x512xf32>
    %c0_3 = arith.constant 0 : index
    %3 = memref.load %arg1[%c0_3] : memref<1xf32, #tpu.memory_space<smem>>
    %4 = vector.broadcast %3 : f32 to vector<64x512xf32>
    %5 = arith.addf %2, %4 : vector<64x512xf32>
    %cst_4 = arith.constant 0.000000e+00 : f32
    %6 = vector.broadcast %cst_4 : f32 to vector<64x512xf32>
    %7 = arith.maximumf %5, %6 : vector<64x512xf32>
    %c0_5 = arith.constant 0 : index
    %c0_6 = arith.constant 0 : index
    %8 = vector.load %arg3[%c0_5, %c0_6] : memref<32x64xbf16, #tpu.memory_space<vmem>>, vector<32x64xbf16>
    %9 = arith.truncf %7 : vector<64x512xf32> to vector<64x512xbf16>
    %cst_7 = arith.constant dense<0.000000e+00> : vector<32x512xf32>
    %10 = tpu.matmul %8, %9, %cst_7 {dimension_numbers = #tpu.dot_dimension_numbers<[1], [0], [0], [1], [0, 0, 1, 1], [], []>} : vector<32x64xbf16>, vector<64x512xbf16>, vector<32x512xf32> -> vector<32x512xf32>
    %c0_8 = arith.constant 0 : index
    %c0_9 = arith.constant 0 : index
    %11 = vector.load %arg4[%c0_8, %c0_9] : memref<32x1xf32, #tpu.memory_space<vmem>>, vector<32x1xf32>
    %12 = vector.broadcast %11 : vector<32x1xf32> to vector<32x512xf32>
    %13 = arith.addf %10, %12 : vector<32x512xf32>
    %c0_10 = arith.constant 0 : index
    %c0_11 = arith.constant 0 : index
    %14 = vector.load %arg6[%c0_10, %c0_11] : memref<32x512xf32, #tpu.memory_space<vmem>>, vector<32x512xf32>
    tpu.vector_store %arg6[%c0_10, %c0_11], %13 {strides = array<i32>} : memref<32x512xf32, #tpu.memory_space<vmem>>, vector<32x512xf32>,
    return
  }
  func.func @transform_0(%arg0: i32) -> i32 {
    %c0_i32 = arith.constant 0 : i32
    %c0_i32_0 = arith.constant 0 : i32
    return %c0_i32 : i32
  }
  func.func @transform_1(%arg0: i32) -> (i32, i32) {
    %c0_i32 = arith.constant 0 : i32
    %c0_i32_0 = arith.constant 0 : i32
    %c0_i32_1 = arith.constant 0 : i32
    return %c0_i32, %c0_i32_0 : i32, i32
  }
  func.func @transform_2(%arg0: i32) -> (i32, i32) {
    %c0_i32 = arith.constant 0 : i32
    %c0_i32_0 = arith.constant 0 : i32
    %c0_i32_1 = arith.constant 0 : i32
    return %c0_i32, %c0_i32_0 : i32, i32
  }
  func.func @transform_3(%arg0: i32) -> (i32, i32) {
    %c0_i32 = arith.constant 0 : i32
    %c0_i32_0 = arith.constant 0 : i32
    %c0_i32_1 = arith.constant 0 : i32
    return %c0_i32, %c0_i32_0 : i32, i32
  }
  func.func @transform_4(%arg0: i32) -> (i32, i32) {
    %c0_i32 = arith.constant 0 : i32
    %c0_i32_0 = arith.constant 0 : i32
    return %c0_i32, %arg0 : i32, i32
  }
  func.func @transform_5(%arg0: i32) -> (i32, i32) {
    %c0_i32 = arith.constant 0 : i32
    %c0_i32_0 = arith.constant 0 : i32
    return %c0_i32, %arg0 : i32, i32
  }
}

</mosaic_0001>

<bundles_post_ra>
// kernel: visual_feature_extractor.1
= control target key start
LH: loop header
LB: loop body
LE: loop exit
PB: predicated region body
PF: predicated region fallthrough
CT: control target
= control target key end

     0   :  { %s1257_s0 = inlined_call_operand.<no memory space> [shape: f32[1], index: 0, kind: input, shape index: {}]   ;;  %s1258_s1 = inlined_call_operand.vmem [shape: bf16[64,64], index: 1, kind: input, shape index: {}]   ;;  %s1259_s2 = inlined_call_operand.vmem [shape: bf16[32,64], index: 2, kind: input, shape index: {}]   ;;  %s1260_s3 = inlined_call_operand.vmem [shape: f32[32,1], index: 3, kind: input, shape index: {}]   ;;  %s1261_s4 = inlined_call_operand.vmem [shape: bf16[64,2048], index: 4, kind: input, shape index: {}]   ;;  %s1262_s5 = inlined_call_operand.vmem [shape: f32[32,2048], index: 5, kind: output, shape index: {}]  }
   0x1   :  { %10 = sst [smem:[#allocation2]] %s1257_s0 }
   0x2   :  { %s1051_s20 = smov 0   ;;  %s1053_s21 = smov 0  }
   0x3   :  { %s1055_s22 = smov 0  }
   0x4 LB: > { %s885_s0 = sadd.s32 4294967295, %s1015_s22   ;;  %s1068_s23 = sadd.s32 1, %s1015_s22   ;;  %s1015_s22 = sphi %s1055_s22, %s1266_s22   ;;  %s1011_s21 = sphi %s1053_s21, %s1265_s21   ;;  %s1007_s20 = sphi %s1051_s20, %s1264_s20  }
   0x5   : > { %s104_s24 = ssub.s32 %s1015_s22, %s1068_s23  ;;  %s107_s25 = sadd.s32 1, %s1011_s21 }
   0x6   : > { %p105_p0 = scmp.eq.s32.totalorder %s104_s24, 0  ;;  %p114_p1 = scmp.ne.s32.totalorder %s1011_s21, %s1007_s20 }
   0x7   : > { %p115_p2 = scmp.eq.s32.totalorder %s1015_s22, 0  ;;  %p144_p3 = scmp.eq.s32.totalorder %s885_s0, 3 }
   0x8   : > { %s1079_s26 = scalar_select %p105_p0, %s1011_s21, %s107_s25  }
   0x9   : > { %p116_p4 = por %p115_p2, %p114_p1  ;;  %p1081_p5 = por %p144_p3, %p114_p1 }
   0xa   : > { %p888_p6 = scmp.ge.s32.totalorder %s1015_s22, 4 }
   0xc   : > { %178 = sbr.rel (%p888_p6) target bundleno = 31 (0x1f), region = 32 }
  0x13   : > { %181 = sbr.rel (!%p116_p4) target bundleno = 31 (0x1f), region = 36  ;;  %s183_s28 = sand.u32 (%p116_p4), 1, %s1011_s21  }
  0x14   : > { %s934_s29 = sshll.u32 (%p116_p4), %s1015_s22, 4  ;;  %s889_s30 = sshll.u32 (%p116_p4), %s183_s28, 7 }
  0x15   : > { %s1091_s8 = scalar_lea.vmem (%p116_p4), %s1261_s4, %s934_s29  ;;  %s185_s9 = scalar_lea.vmem (%p116_p4), [#allocation3], %s889_s30 }
  0x16   : > { %v201_v0 = vld [vmem:[%s1091_s8] sm:$0xff] (%p116_p4)  ;;  %v203_v1 = vld [vmem:[%s1091_s8 + $0x8] sm:$0xff] (%p116_p4) }
  0x17   : > { %v205_v2 = vld [vmem:[%s1091_s8 + $0x40] sm:$0xff] (%p116_p4)  ;;  %202 = vst [vmem:[%s185_s9] sm:$0xff] (%p116_p4), %v201_v0  ;;  %204 = vst [vmem:[%s185_s9 + $0x8] sm:$0xff] (%p116_p4), %v203_v1  ;;  %v207_v3 = vld [vmem:[%s1091_s8 + $0x48] sm:$0xff] (%p116_p4) }
  0x18   : > { %206 = vst [vmem:[%s185_s9 + $0x10] sm:$0xff] (%p116_p4), %v205_v2  ;;  %v209_v4 = vld [vmem:[%s1091_s8 + $0x80] sm:$0xff] (%p116_p4)  ;;  %v211_v5 = vld [vmem:[%s1091_s8 + $0x88] sm:$0xff] (%p116_p4)  ;;  %208 = vst [vmem:[%s185_s9 + $0x18] sm:$0xff] (%p116_p4), %v207_v3 }
  0x19   : > { %210 = vst [vmem:[%s185_s9 + $0x20] sm:$0xff] (%p116_p4), %v209_v4  ;;  %212 = vst [vmem:[%s185_s9 + $0x28] sm:$0xff] (%p116_p4), %v211_v5  ;;  %v213_v6 = vld [vmem:[%s1091_s8 + $0xc0] sm:$0xff] (%p116_p4)  ;;  %v215_v7 = vld [vmem:[%s1091_s8 + $0xc8] sm:$0xff] (%p116_p4) }
  0x1a   : > { %v217_v8 = vld [vmem:[%s1091_s8 + $0x100] sm:$0xff]  ;;  %214 = vst [vmem:[%s185_s9 + $0x30] sm:$0xff] %v213_v6  ;;  %216 = vst [vmem:[%s185_s9 + $0x38] sm:$0xff] %v215_v7  ;;  %v219_v9 = vld [vmem:[%s1091_s8 + $0x108] sm:$0xff] }
  0x1b   : > { %218 = vst [vmem:[%s185_s9 + $0x40] sm:$0xff] %v217_v8  ;;  %v221_v10 = vld [vmem:[%s1091_s8 + $0x140] sm:$0xff]  ;;  %v223_v11 = vld [vmem:[%s1091_s8 + $0x148] sm:$0xff]  ;;  %220 = vst [vmem:[%s185_s9 + $0x48] sm:$0xff] %v219_v9 }
  0x1c   : > { %222 = vst [vmem:[%s185_s9 + $0x50] sm:$0xff] %v221_v10  ;;  %224 = vst [vmem:[%s185_s9 + $0x58] sm:$0xff] %v223_v11  ;;  %v225_v12 = vld [vmem:[%s1091_s8 + $0x180] sm:$0xff]  ;;  %v227_v13 = vld [vmem:[%s1091_s8 + $0x188] sm:$0xff] }
  0x1d   : > { %v229_v14 = vld [vmem:[%s1091_s8 + $0x1c0] sm:$0xff]  ;;  %226 = vst [vmem:[%s185_s9 + $0x60] sm:$0xff] %v225_v12  ;;  %228 = vst [vmem:[%s185_s9 + $0x68] sm:$0xff] %v227_v13  ;;  %v231_v15 = vld [vmem:[%s1091_s8 + $0x1c8] sm:$0xff] }
  0x1e   : > { %230 = vst [vmem:[%s185_s9 + $0x70] sm:$0xff] %v229_v14  ;;  %232 = vst [vmem:[%s185_s9 + $0x78] sm:$0xff] %v231_v15 }
  0x1f PF: > { %p892_p7 = scmp.ge.s32.totalorder %s1015_s22, 1  ;;  %p237_p8 = scmp.lt.s32.totalorder %s1015_s22, 5 }
  0x21   : > { %p238_p9 = pnand %p892_p7, %p237_p8 }
  0x22   : > { %s244_s10 = sand.u32 (!%p238_p9), 1, %s1007_s20   ;;  %v1017_v16 = vmov (!%p238_p9), 0   ;;  %v987_v33 = vld [vmem:[%s1258_s1] sm:$0xff] (!%p238_p9)   ;;  %vm399_vm0 = vcmask (!%p238_p9), 523264   ;;  %v988_v34 = vld [vmem:[%s1258_s1 + $0x8] sm:$0xff] (!%p238_p9)   ;;  %v989_v35 = vld [vmem:[%s1258_s1 + $0x10] sm:$0xff] (!%p238_p9)  }
  0x23   : > { %241 = sbr.rel (%p238_p9) target bundleno = 537 (0x219), region = 59  ;;  %s1112_s11 = sshll.u32 (!%p238_p9), %s244_s10, 7  ;;  %444 = vmatprep.mubr.bf16.mxu0 (!%p238_p9), %v1017_v16  ;;  %517 = vmatprep.mubr.bf16.mxu1 (!%p238_p9), %v1017_v16  ;;  %v990_v36 = vld [vmem:[%s1258_s1 + $0x18] sm:$0xff] (!%p238_p9)   ;;  %v610_v37 = vld [vmem:[%s1260_s3] sm:$0xff] (!%p238_p9)  ;;  %v612_v38 = vld [vmem:[%s1260_s3 + $0x10] sm:$0xff] (!%p238_p9) }
  0x24   : > { %961 = vset.pattern.permute.xlu0 (!%p238_p9), %v1017_v16  ;;  %962 = vset.pattern.permute.xlu1 (!%p238_p9), %v1017_v16  ;;  %s246_s12 = scalar_lea.vmem (!%p238_p9), [#allocation3], %s1112_s11  ;;  %v611_v39 = vld [vmem:[%s1260_s3 + $0x8] sm:$0xff] (!%p238_p9)  ;;  %v613_v40 = vld [vmem:[%s1260_s3 + $0x18] sm:$0xff] (!%p238_p9)  ;;  %s297_s9 = sld [smem:[#allocation2]] (!%p238_p9) }
  0x25   : > { %v963_v17 = vld [vmem:[%s246_s12 + $0x4] ss:$16 sps:$4 sm:$0xff] (!%p238_p9)   ;;  %v965_v18 = vld [vmem:[%s246_s12 + $0xc] ss:$16 sps:$4 sm:$0xff] (!%p238_p9)   ;;  %v967_v19 = vld [vmem:[%s246_s12] ss:$16 sps:$4 sm:$0xff] (!%p238_p9)   ;;  %616 = vperm.xlu0 (!%p238_p9), %961, %v610_v37   ;;  %626 = vperm.xlu1 (!%p238_p9), %962, %v612_v38  }
  0x26   : > { %412 = vmatprep.subr.bf16.mxu0 (!%p238_p9), %v963_v17  ;;  %v968_v20 = vld [vmem:[%s246_s12 + $0x8] ss:$16 sps:$4 sm:$0xff] (!%p238_p9)   ;;  %485 = vmatprep.subr.bf16.mxu1 (!%p238_p9), %v965_v18  ;;  %v969_v21 = vld [vmem:[%s246_s12 + $0x24] ss:$16 sps:$4 sm:$0xff] (!%p238_p9)   ;;  %v971_v22 = vld [vmem:[%s246_s12 + $0x2c] ss:$16 sps:$4 sm:$0xff] (!%p238_p9)  }
  0x27   : > { %413 = vmatpush1.bf16.msra.mxu0 (!%p238_p9), %v967_v19  ;;  %486 = vmatpush1.bf16.msra.mxu1 (!%p238_p9), %v968_v20  ;;  %v973_v23 = vld [vmem:[%s246_s12 + $0x20] ss:$16 sps:$4 sm:$0xff] (!%p238_p9)   ;;  %v974_v24 = vld [vmem:[%s246_s12 + $0x28] ss:$16 sps:$4 sm:$0xff] (!%p238_p9)   ;;  %v975_v25 = vld [vmem:[%s246_s12 + $0x44] ss:$16 sps:$4 sm:$0xff] (!%p238_p9)  }
  0x28   : > { %414 = vmatprep.subr.bf16.mxu0 (!%p238_p9), %v969_v21  ;;  %487 = vmatprep.subr.bf16.mxu1 (!%p238_p9), %v971_v22  ;;  %v977_v26 = vld [vmem:[%s246_s12 + $0x4c] ss:$16 sps:$4 sm:$0xff] (!%p238_p9)   ;;  %v979_v27 = vld [vmem:[%s246_s12 + $0x40] ss:$16 sps:$4 sm:$0xff] (!%p238_p9)   ;;  %v980_v28 = vld [vmem:[%s246_s12 + $0x48] ss:$16 sps:$4 sm:$0xff] (!%p238_p9)  }
  0x29   : > { %v981_v29 = vld [vmem:[%s246_s12 + $0x64] ss:$16 sps:$4 sm:$0xff] (!%p238_p9)   ;;  %v983_v30 = vld [vmem:[%s246_s12 + $0x6c] ss:$16 sps:$4 sm:$0xff] (!%p238_p9)   ;;  %v985_v31 = vld [vmem:[%s246_s12 + $0x60] ss:$16 sps:$4 sm:$0xff] (!%p238_p9)   ;;  %621 = vperm.xlu0 (!%p238_p9), %961, %v611_v39   ;;  %631 = vperm.xlu1 (!%p238_p9), %962, %v613_v40  }
  0x2a   : > { %v986_v32 = vld [vmem:[%s246_s12 + $0x68] ss:$16 sps:$4 sm:$0xff]   ;;  %v1159_v41 = vstv %s297_s9  ;;  %s1206_s15 = scalar_lea.vmem [#allocation4], %s1112_s11  ;;  %s935_s11 = sshll.u32 (%p1081_p5), %s885_s0, 5 }
  0x2b   : > { %415 = vmatpush1.bf16.msra.mxu0 %v973_v23  ;;  %488 = vmatpush1.bf16.msra.mxu1 %v974_v24  ;;  %s781_s27 = scalar_lea.vmem (%p1081_p5), %s1262_s5, %s935_s11 }
  0x2c   : > { %416 = vmatprep.subr.bf16.mxu0 %v975_v25  ;;  %489 = vmatprep.subr.bf16.mxu1 %v977_v26 }
  0x2f   : > { %417 = vmatpush1.bf16.msra.mxu0 %v979_v27  ;;  %490 = vmatpush1.bf16.msra.mxu1 %v980_v28 }
  0x30   : > { %418 = vmatprep.subr.bf16.mxu0 %v981_v29  ;;  %491 = vmatprep.subr.bf16.mxu1 %v983_v30 }
  0x33   : > { %419 = vmatpush1.bf16.msra.mxu0 %v985_v31  ;;  %492 = vmatpush1.bf16.msra.mxu1 %v986_v32 }
  0x36   : > { %915 = vmatmul.mubr.msk.bf16.vlgmr.msra.gmra.mrb[0].mxu0 %vm399_vm0, %v987_v33  ;;  %919 = vmatmul.mubr.msk.bf16.vlgmr.msra.gmra.mrb[0].mxu1 %vm399_vm0, %v987_v33 }
  0x37   : > { %454 = vmatprep.mubr.bf16.mxu0 %v1017_v16  ;;  %527 = vmatprep.mubr.bf16.mxu1 %v1017_v16 }
  0x3e   : > { %916 = vmatmul.mubr.msk.bf16.gmra.mrb[4].mxu0 %vm399_vm0, %v988_v34  ;;  %920 = vmatmul.mubr.msk.bf16.gmra.mrb[4].mxu1 %vm399_vm0, %v988_v34 }
  0x3f   : > { %464 = vmatprep.mubr.bf16.mxu0 %v1017_v16  ;;  %537 = vmatprep.mubr.bf16.mxu1 %v1017_v16 }
  0x46   : > { %917 = vmatmul.mubr.msk.bf16.gmra.mrb[8].mxu0 %vm399_vm0, %v989_v35  ;;  %921 = vmatmul.mubr.msk.bf16.gmra.mrb[8].mxu1 %vm399_vm0, %v989_v35 }
  0x47   : > { %474 = vmatprep.mubr.bf16.mxu0 %v1017_v16  ;;  %547 = vmatprep.mubr.bf16.mxu1 %v1017_v16 }
  0x4e   : > { %918 = vmatmul.mubr.msk.bf16.gmra.mrb[12].mxu0 %vm399_vm0, %v990_v36  ;;  %922 = vmatmul.mubr.msk.bf16.gmra.mrb[12].mxu1 %vm399_vm0, %v990_v36 }
  0x4f   : > { %682 = vmatprep.mubr.bf16.mxu0 %v1017_v16  ;;  %735 = vmatprep.mubr.bf16.mxu1 %v1017_v16 }
 0x109   : > { %v446_v42 = vpop.f32.mrb[0].mxu0  ;;  %v519_v43 = vpop.f32.mrb[0].mxu1 }
 0x10a   : > { %v447_v44 = vadd.f32 %v446_v42, %v1159_v41  ;;  %v520_v45 = vadd.f32 %v519_v43, %v1159_v41  ;;  %v448_v46 = vpop.f32.mrb[1].mxu0  ;;  %v521_v47 = vpop.f32.mrb[1].mxu1 }
 0x10b   : > { %v449_v48 = vadd.f32 %v448_v46, %v1159_v41  ;;  %v522_v49 = vadd.f32 %v521_v47, %v1159_v41  ;;  %v450_v50 = vpop.f32.mrb[2].mxu0  ;;  %v523_v51 = vpop.f32.mrb[2].mxu1 }
 0x10c   : > { %v451_v52 = vadd.f32 %v450_v50, %v1159_v41  ;;  %v524_v53 = vadd.f32 %v523_v51, %v1159_v41  ;;  %v452_v54 = vpop.f32.mrb[3].mxu0  ;;  %v525_v55 = vpop.f32.mrb[3].mxu1  ;;  %v558_v58 = vmax.f32 %v447_v44, 0.0  ;;  %v560_v59 = vmax.f32 %v520_v45, 0.0 }
 0x10d   : > { %v453_v56 = vadd.f32 %v452_v54, %v1159_v41  ;;  %v526_v57 = vadd.f32 %v525_v55, %v1159_v41  ;;  %v559_v62 = vmax.f32 %v449_v48, 0.0  ;;  %v561_v63 = vmax.f32 %v522_v49, 0.0 }
 0x10e   : > { %v562_v60 = vmax.f32 %v451_v52, 0.0  ;;  %v564_v61 = vmax.f32 %v524_v53, 0.0 }
 0x10f   : > { %v563_v0 = vmax.f32 %v453_v56, 0.0  ;;  %v565_v1 = vmax.f32 %v526_v57, 0.0 }
 0x110   : > { %v594_v2 = vpack.c.bf16 %v562_v60, %v558_v58  ;;  %v596_v3 = vpack.c.bf16 %v564_v61, %v560_v59 }
 0x111   : > { %v595_v4 = vpack.c.bf16 %v563_v0, %v559_v62  ;;  %v597_v5 = vpack.c.bf16 %v565_v1, %v561_v63  ;;  %v456_v6 = vpop.f32.mrb[4].mxu0  ;;  %v529_v7 = vpop.f32.mrb[4].mxu1 }
 0x112   : > { %v457_v8 = vadd.f32 %v456_v6, %v1159_v41  ;;  %v530_v9 = vadd.f32 %v529_v7, %v1159_v41  ;;  %v458_v10 = vpop.f32.mrb[5].mxu0  ;;  %v531_v11 = vpop.f32.mrb[5].mxu1 }
 0x113   : > { %v459_v12 = vadd.f32 %v458_v10, %v1159_v41  ;;  %v532_v13 = vadd.f32 %v531_v11, %v1159_v41  ;;  %v460_v14 = vpop.f32.mrb[6].mxu0  ;;  %v533_v15 = vpop.f32.mrb[6].mxu1  ;;  %650 = vmatprep.subr.bf16.mxu0 %v595_v4  ;;  %703 = vmatprep.subr.bf16.mxu1 %v597_v5 }
 0x114   : > { %v461_v17 = vadd.f32 %v460_v14, %v1159_v41  ;;  %v534_v18 = vadd.f32 %v533_v15, %v1159_v41  ;;  %v462_v19 = vpop.f32.mrb[7].mxu0  ;;  %v535_v20 = vpop.f32.mrb[7].mxu1  ;;  %651 = vmatpush1.bf16.msra.mxu0 %v594_v2  ;;  %704 = vmatpush1.bf16.msra.mxu1 %v596_v3  ;;  %v566_v23 = vmax.f32 %v457_v8, 0.0  ;;  %v568_v24 = vmax.f32 %v530_v9, 0.0 }
 0x115   : > { %v463_v21 = vadd.f32 %v462_v19, %v1159_v41  ;;  %v536_v22 = vadd.f32 %v535_v20, %v1159_v41  ;;  %v567_v27 = vmax.f32 %v459_v12, 0.0  ;;  %v569_v28 = vmax.f32 %v532_v13, 0.0 }
 0x116   : > { %v570_v25 = vmax.f32 %v461_v17, 0.0  ;;  %v572_v26 = vmax.f32 %v534_v18, 0.0 }
 0x117   : > { %v571_v29 = vmax.f32 %v463_v21, 0.0  ;;  %v573_v30 = vmax.f32 %v536_v22, 0.0 }
 0x118   : > { %v598_v31 = vpack.c.bf16 %v570_v25, %v566_v23  ;;  %v600_v32 = vpack.c.bf16 %v572_v26, %v568_v24 }
 0x119   : > { %v599_v33 = vpack.c.bf16 %v571_v29, %v567_v27  ;;  %v601_v34 = vpack.c.bf16 %v573_v30, %v569_v28  ;;  %v466_v35 = vpop.f32.mrb[8].mxu0  ;;  %v539_v36 = vpop.f32.mrb[8].mxu1  ;;  %v991_v29 = vld [vmem:[%s1259_s2] sm:$0xff]  }
 0x11a   : > { %v467_v37 = vadd.f32 %v466_v35, %v1159_v41  ;;  %v540_v38 = vadd.f32 %v539_v36, %v1159_v41  ;;  %v468_v39 = vpop.f32.mrb[9].mxu0  ;;  %v541_v40 = vpop.f32.mrb[9].mxu1 }
 0x11b   : > { %v469_v42 = vadd.f32 %v468_v39, %v1159_v41  ;;  %v542_v43 = vadd.f32 %v541_v40, %v1159_v41  ;;  %v470_v44 = vpop.f32.mrb[10].mxu0  ;;  %v543_v45 = vpop.f32.mrb[10].mxu1  ;;  %652 = vmatprep.subr.bf16.mxu0 %v599_v33  ;;  %705 = vmatprep.subr.bf16.mxu1 %v601_v34 }
 0x11c   : > { %v471_v46 = vadd.f32 %v470_v44, %v1159_v41  ;;  %v544_v47 = vadd.f32 %v543_v45, %v1159_v41  ;;  %v472_v48 = vpop.f32.mrb[11].mxu0  ;;  %v545_v49 = vpop.f32.mrb[11].mxu1  ;;  %653 = vmatpush1.bf16.msra.mxu0 %v598_v31  ;;  %706 = vmatpush1.bf16.msra.mxu1 %v600_v32  ;;  %v574_v52 = vmax.f32 %v467_v37, 0.0  ;;  %v576_v53 = vmax.f32 %v540_v38, 0.0 }
 0x11d   : > { %v473_v50 = vadd.f32 %v472_v48, %v1159_v41  ;;  %v546_v51 = vadd.f32 %v545_v49, %v1159_v41  ;;  %v575_v56 = vmax.f32 %v469_v42, 0.0  ;;  %v577_v57 = vmax.f32 %v542_v43, 0.0  ;;  %v617_v30 = vpop.permute.xlu0 %616  ;;  %v627_v32 = vpop.permute.xlu1 %626 }
 0x11e   : > { %v578_v54 = vmax.f32 %v471_v46, 0.0  ;;  %v580_v55 = vmax.f32 %v544_v47, 0.0 }
 0x11f   : > { %v579_v58 = vmax.f32 %v473_v50, 0.0  ;;  %v581_v59 = vmax.f32 %v546_v51, 0.0 }
 0x120   : > { %v602_v60 = vpack.c.bf16 %v578_v54, %v574_v52  ;;  %v604_v61 = vpack.c.bf16 %v580_v55, %v576_v53 }
 0x121   : > { %v603_v62 = vpack.c.bf16 %v579_v58, %v575_v56  ;;  %v605_v63 = vpack.c.bf16 %v581_v59, %v577_v57  ;;  %v476_v0 = vpop.f32.mrb[12].mxu0  ;;  %v549_v1 = vpop.f32.mrb[12].mxu1 }
 0x122   : > { %v477_v2 = vadd.f32 %v476_v0, %v1159_v41  ;;  %v550_v3 = vadd.f32 %v549_v1, %v1159_v41  ;;  %v478_v4 = vpop.f32.mrb[13].mxu0  ;;  %v551_v5 = vpop.f32.mrb[13].mxu1 }
 0x123   : > { %v479_v6 = vadd.f32 %v478_v4, %v1159_v41  ;;  %v552_v7 = vadd.f32 %v551_v5, %v1159_v41  ;;  %v480_v8 = vpop.f32.mrb[14].mxu0  ;;  %v553_v9 = vpop.f32.mrb[14].mxu1  ;;  %654 = vmatprep.subr.bf16.mxu0 %v603_v62  ;;  %707 = vmatprep.subr.bf16.mxu1 %v605_v63 }
 0x124   : > { %v481_v10 = vadd.f32 %v480_v8, %v1159_v41  ;;  %v554_v11 = vadd.f32 %v553_v9, %v1159_v41  ;;  %v482_v12 = vpop.f32.mrb[15].mxu0  ;;  %v555_v13 = vpop.f32.mrb[15].mxu1  ;;  %655 = vmatpush1.bf16.msra.mxu0 %v602_v60  ;;  %708 = vmatpush1.bf16.msra.mxu1 %v604_v61  ;;  %v582_v17 = vmax.f32 %v477_v2, 0.0  ;;  %v584_v18 = vmax.f32 %v550_v3, 0.0 }
 0x125   : > { %v483_v14 = vadd.f32 %v482_v12, %v1159_v41  ;;  %v556_v15 = vadd.f32 %v555_v13, %v1159_v41  ;;  %v583_v21 = vmax.f32 %v479_v6, 0.0  ;;  %v585_v22 = vmax.f32 %v552_v7, 0.0  ;;  %v992_v41 = vld [vmem:[%s1259_s2 + $0x8] sm:$0xff]   ;;  %v622_v31 = vpop.permute.xlu0 %621  ;;  %v632_v49 = vpop.permute.xlu1 %631 }
 0x126   : > { %v586_v19 = vmax.f32 %v481_v10, 0.0  ;;  %v588_v20 = vmax.f32 %v554_v11, 0.0 }
 0x127   : > { %v587_v23 = vmax.f32 %v483_v14, 0.0  ;;  %v589_v24 = vmax.f32 %v556_v15, 0.0 }
 0x128   : > { %v606_v25 = vpack.c.bf16 %v586_v19, %v582_v17  ;;  %v608_v26 = vpack.c.bf16 %v588_v20, %v584_v18 }
 0x129   : > { %v607_v27 = vpack.c.bf16 %v587_v23, %v583_v21  ;;  %v609_v28 = vpack.c.bf16 %v589_v24, %v585_v22 }
 0x12b   : > { %656 = vmatprep.subr.bf16.mxu0 %v607_v27  ;;  %709 = vmatprep.subr.bf16.mxu1 %v609_v28 }
 0x12c   : > { %657 = vmatpush1.bf16.msra.mxu0 %v606_v25  ;;  %710 = vmatpush1.bf16.msra.mxu1 %v608_v26 }
 0x12f   : > { %925 = vmatmul.mubr.msk.bf16.vlgmr.msra.gmra.mrb[16].mxu0 %vm399_vm0, %v991_v29  ;;  %927 = vmatmul.mubr.msk.bf16.vlgmr.msra.gmra.mrb[16].mxu1 %vm399_vm0, %v991_v29 }
 0x130   : > { %692 = vmatprep.mubr.bf16.mxu0 %v1017_v16  ;;  %745 = vmatprep.mubr.bf16.mxu1 %v1017_v16 }
 0x137   : > { %926 = vmatmul.mubr.msk.bf16.gmra.mrb[20].mxu0 %vm399_vm0, %v992_v41  ;;  %928 = vmatmul.mubr.msk.bf16.gmra.mrb[20].mxu1 %vm399_vm0, %v992_v41 }
 0x202   : > { %v684_v33 = vpop.f32.mrb[16].mxu0  ;;  %v737_v34 = vpop.f32.mrb[16].mxu1 }
 0x203   : > { %v685_v35 = vadd.f32 %v684_v33, %v617_v30  ;;  %v738_v36 = vadd.f32 %v737_v34, %v617_v30  ;;  %v686_v37 = vpop.f32.mrb[17].mxu0  ;;  %v739_v38 = vpop.f32.mrb[17].mxu1 }
 0x204   : > { %v687_v39 = vadd.f32 %v686_v37, %v617_v30  ;;  %v740_v16 = vadd.f32 %v739_v38, %v617_v30  ;;  %v688_v40 = vpop.f32.mrb[18].mxu0  ;;  %v741_v42 = vpop.f32.mrb[18].mxu1 }
 0x205   : > { %756 = vst [vmem:[%s1206_s15] sm:$0xff] %v685_v35  ;;  %758 = vst [vmem:[%s1206_s15 + $0x10] sm:$0xff] %v738_v36  ;;  %v689_v43 = vadd.f32 %v688_v40, %v622_v31  ;;  %v742_v44 = vadd.f32 %v741_v42, %v622_v31  ;;  %v690_v45 = vpop.f32.mrb[19].mxu0  ;;  %v743_v46 = vpop.f32.mrb[19].mxu1 }
 0x206   : > { %757 = vst [vmem:[%s1206_s15 + $0x8] sm:$0xff] %v687_v39  ;;  %759 = vst [vmem:[%s1206_s15 + $0x18] sm:$0xff] %v740_v16  ;;  %v691_v47 = vadd.f32 %v690_v45, %v622_v31  ;;  %v744_v48 = vadd.f32 %v743_v46, %v622_v31 }
 0x207   : > { %760 = vst [vmem:[%s1206_s15 + $0x20] sm:$0xff] %v689_v43  ;;  %762 = vst [vmem:[%s1206_s15 + $0x30] sm:$0xff] %v742_v44 }
 0x208   : > { %761 = vst [vmem:[%s1206_s15 + $0x28] sm:$0xff] %v691_v47  ;;  %763 = vst [vmem:[%s1206_s15 + $0x38] sm:$0xff] %v744_v48 }
 0x20a   : > { %v694_v50 = vpop.f32.mrb[20].mxu0  ;;  %v747_v51 = vpop.f32.mrb[20].mxu1  ;;  %778 = sbr.rel (!%p1081_p5) target bundleno = 537 (0x219), region = 67 }
 0x20b   : > { %v695_v52 = vadd.f32 %v694_v50, %v627_v32  ;;  %v748_v53 = vadd.f32 %v747_v51, %v627_v32  ;;  %v696_v54 = vpop.f32.mrb[21].mxu0  ;;  %v749_v55 = vpop.f32.mrb[21].mxu1 }
 0x20c   : > { %v697_v56 = vadd.f32 %v696_v54, %v627_v32  ;;  %v750_v57 = vadd.f32 %v749_v55, %v627_v32  ;;  %v698_v58 = vpop.f32.mrb[22].mxu0  ;;  %v751_v59 = vpop.f32.mrb[22].mxu1  ;;  %v794_v2 = vld [vmem:[%s1206_s15] sm:$0xff] (%p1081_p5)  ;;  %v798_v4 = vld [vmem:[%s1206_s15 + $0x10] sm:$0xff] (%p1081_p5) }
 0x20d   : > { %764 = vst [vmem:[%s1206_s15 + $0x40] sm:$0xff] %v695_v52  ;;  %766 = vst [vmem:[%s1206_s15 + $0x50] sm:$0xff] %v748_v53  ;;  %v699_v60 = vadd.f32 %v698_v58, %v632_v49  ;;  %v752_v61 = vadd.f32 %v751_v59, %v632_v49  ;;  %v700_v62 = vpop.f32.mrb[23].mxu0  ;;  %v753_v63 = vpop.f32.mrb[23].mxu1  ;;  %v796_v3 = vld [vmem:[%s1206_s15 + $0x8] sm:$0xff] (%p1081_p5)  ;;  %v800_v5 = vld [vmem:[%s1206_s15 + $0x18] sm:$0xff] (%p1081_p5) }
 0x20e   : > { %765 = vst [vmem:[%s1206_s15 + $0x48] sm:$0xff] %v697_v56  ;;  %767 = vst [vmem:[%s1206_s15 + $0x58] sm:$0xff] %v750_v57  ;;  %v701_v0 = vadd.f32 %v700_v62, %v632_v49  ;;  %v754_v1 = vadd.f32 %v753_v63, %v632_v49  ;;  %v802_v6 = vld [vmem:[%s1206_s15 + $0x20] sm:$0xff] (%p1081_p5)  ;;  %v806_v8 = vld [vmem:[%s1206_s15 + $0x30] sm:$0xff] (%p1081_p5) }
 0x20f   : > { %768 = vst [vmem:[%s1206_s15 + $0x60] sm:$0xff] %v699_v60  ;;  %770 = vst [vmem:[%s1206_s15 + $0x70] sm:$0xff] %v752_v61  ;;  %v804_v7 = vld [vmem:[%s1206_s15 + $0x28] sm:$0xff] (%p1081_p5)  ;;  %v808_v9 = vld [vmem:[%s1206_s15 + $0x38] sm:$0xff] (%p1081_p5) }
 0x210   : > { %769 = vst [vmem:[%s1206_s15 + $0x68] sm:$0xff] %v701_v0  ;;  %771 = vst [vmem:[%s1206_s15 + $0x78] sm:$0xff] %v754_v1 }
 0x211   : > { %795 = vst [vmem:[%s781_s27] sm:$0xff] %v794_v2  ;;  %797 = vst [vmem:[%s781_s27 + $0x8] sm:$0xff] %v796_v3 }
 0x212   : > { %799 = vst [vmem:[%s781_s27 + $0x10] sm:$0xff] %v798_v4  ;;  %801 = vst [vmem:[%s781_s27 + $0x18] sm:$0xff] %v800_v5 }
 0x213   : > { %803 = vst [vmem:[%s781_s27 + $0x80] sm:$0xff] %v802_v6  ;;  %805 = vst [vmem:[%s781_s27 + $0x88] sm:$0xff] %v804_v7 }
 0x214   : > { %v810_v10 = vld [vmem:[%s1206_s15 + $0x40] sm:$0xff]  ;;  %807 = vst [vmem:[%s781_s27 + $0x90] sm:$0xff] %v806_v8  ;;  %809 = vst [vmem:[%s781_s27 + $0x98] sm:$0xff] %v808_v9  ;;  %v814_v12 = vld [vmem:[%s1206_s15 + $0x50] sm:$0xff] }
 0x215   : > { %811 = vst [vmem:[%s781_s27 + $0x100] sm:$0xff] %v810_v10  ;;  %v812_v11 = vld [vmem:[%s1206_s15 + $0x48] sm:$0xff]  ;;  %v816_v13 = vld [vmem:[%s1206_s15 + $0x58] sm:$0xff]  ;;  %815 = vst [vmem:[%s781_s27 + $0x110] sm:$0xff] %v814_v12 }
 0x216   : > { %813 = vst [vmem:[%s781_s27 + $0x108] sm:$0xff] %v812_v11  ;;  %817 = vst [vmem:[%s781_s27 + $0x118] sm:$0xff] %v816_v13  ;;  %v818_v14 = vld [vmem:[%s1206_s15 + $0x60] sm:$0xff]  ;;  %v822_v17 = vld [vmem:[%s1206_s15 + $0x70] sm:$0xff] }
 0x217   : > { %v820_v15 = vld [vmem:[%s1206_s15 + $0x68] sm:$0xff]  ;;  %819 = vst [vmem:[%s781_s27 + $0x180] sm:$0xff] %v818_v14  ;;  %823 = vst [vmem:[%s781_s27 + $0x190] sm:$0xff] %v822_v17  ;;  %v824_v18 = vld [vmem:[%s1206_s15 + $0x78] sm:$0xff] }
 0x218   : > { %821 = vst [vmem:[%s781_s27 + $0x188] sm:$0xff] %v820_v15  ;;  %825 = vst [vmem:[%s781_s27 + $0x198] sm:$0xff] %v824_v18 }
 0x219 PF: > { %p13_p10 = scmp.ge.s32.totalorder %s1068_s23, 6   ;;  %s1264_s20 = smov %s1011_s21 }
 0x21a   : > { %s1265_s21 = smov %s1079_s26  ;;  %s1266_s22 = smov %s1068_s23 }
 0x21b   :  { %15 = sbr.rel (!%p13_p10) target bundleno = 4 (0x4), region = 121 }

</bundles_post_ra>
